<compile_context>
chip_gen: v7x
topology: tpu7x:2x2x1
jax: 0.10.0
libtpu: 0.0.40
codegen_flags: <defaults>
</compile_context>

<pallas_src>
from functools import lru_cache

import numpy as np
import jax
import jax.numpy as jnp
from jax import lax
from jax.experimental import pallas as pl
from jax.experimental.pallas import tpu as pltpu


# ---------------------------------------------------------------------------
# pltpu.roll direction probe (cached, one tiny kernel per process)
# ---------------------------------------------------------------------------
@lru_cache(maxsize=None)
def _roll_shift_sign() -> int:
    """Sign s so that pltpu.roll(v, (s*d) % L, axis=1)[..., p] == v[..., p+d].

    pltpu.roll follows jnp.roll semantics (out[i] = in[i - shift]) in current
    JAX, but the shift constants below are baked in at trace time, so probe
    the backend once and cache the direction instead of hard-coding it.
    """
    def probe(x_ref, o_ref):
        o_ref[...] = pltpu.roll(x_ref[...], 1, axis=1)

    x = jnp.tile(jnp.arange(128, dtype=jnp.float32), (8, 1))
    out = pl.pallas_call(
        probe, out_shape=jax.ShapeDtypeStruct((8, 128), jnp.float32))(x)
    return -1 if int(out[0, 0]) == 127 else 1


# ---------------------------------------------------------------------------
# Fused BasicBlock kernel
# ---------------------------------------------------------------------------
def _make_kernel(W, Cp, L, roll_sign):
    """Kernel over grid=(G,): one group of images per step, all in VMEM."""
    K9 = 9 * Cp

    def shift_lanes(v, delta):
        # out[..., p] = v[..., p + delta] (circular; wrapped lanes are masked
        # by the caller).  Static, non-negative shift -> single XLU rotate.
        return pltpu.roll(v, (roll_sign * delta) % L, axis=1)

    def kernel(x_ref, masks_ref, w1_ref, w2_ref, o_ref, patches_ref):
        x = x_ref[0]                                   # (Cp, L) f32, lane-dense

        # Precomputed validity masks, already broadcast to Cp sublanes ->
        # plain full-tile loads, zero per-step iota/compare work.
        m_col_l = masks_ref[pl.ds(0 * Cp, Cp), :]      # col >= 1    (dx = -1)
        m_col_r = masks_ref[pl.ds(1 * Cp, Cp), :]      # col <= W-2  (dx = +1)
        m_row_t = masks_ref[pl.ds(2 * Cp, Cp), :]      # row >= 1    (dy = -1)
        m_row_b = masks_ref[pl.ds(3 * Cp, Cp), :]      # row <= H-2  (dy = +1)

        # Bias trick: row K9 of the patch matrix is all-ones and pairs with the
        # bias column of the weight; rows K9+1..K9+7 pair with zero weight
        # columns (inert).  Written every step so the kernel stays correct
        # under any sharding of the "parallel" grid axis across TensorCores.
        patches_ref[pl.ds(K9, 8), :] = jnp.ones((8, L), jnp.float32)

        def conv3x3_bn(inp, w_ref):
            """(Cp, L) -> (Cp, L): 3x3 conv (pad=1), BN scale/bias folded in."""
            # Horizontal taps: one XLU roll + one column-mask multiply each
            # (applied once per dx, not once per (dy, dx) pair).
            h = {
                -1: shift_lanes(inp, -1) * m_col_l,
                0: inp,
                1: shift_lanes(inp, +1) * m_col_r,
            }
            t = 0
            for dy in (-1, 0, 1):
                row_mask = {-1: m_row_t, 0: None, 1: m_row_b}[dy]
                for dx in (-1, 0, 1):
                    tap = h[dx]
                    if dy != 0:
                        # Vertical shift by one image row; the row mask zeroes
                        # lanes whose circular roll wrapped (top/bottom padding,
                        # including across batched-image borders).
                        tap = shift_lanes(tap, dy * W) * row_mask
                    patches_ref[pl.ds(t * Cp, Cp), :] = tap   # 8-row aligned
                    t += 1
            # Single MXU contraction per conv: (Cp, 9*Cp+8) @ (9*Cp+8, L).
            return jnp.dot(w_ref[...], patches_ref[...],
                           preferred_element_type=jnp.float32)

        act = jnp.maximum(conv3x3_bn(x, w1_ref), 0.0)      # conv1 + bn1 + relu
        out = conv3x3_bn(act, w2_ref) + x                  # conv2 + bn2 + skip
        o_ref[0] = jnp.maximum(out, 0.0)                   # relu, full-lane vst

    return kernel


# ---------------------------------------------------------------------------
# Wrapper-side preprocessing
# ---------------------------------------------------------------------------
def _make_masks(H, W, NB, Cp):
    """(4*Cp, NB*H*W) f32 validity masks, built with numpy (hoisted)."""
    L = NB * H * W
    pos = np.arange(L)
    col = pos % W
    row = (pos // W) % H
    rows = np.stack([
        col >= 1,          # dx = -1
        col <= W - 2,      # dx = +1
        row >= 1,          # dy = -1
        row <= H - 2,      # dy = +1
    ]).astype(np.float32)                               # (4, L)
    return jnp.asarray(np.repeat(rows, Cp, axis=0))     # (4*Cp, L)


def _fold_bn_conv_weights(w, gamma, beta, mean, var, Cp, eps=1e-5):
    """BN(conv(x, w)) == conv(x, s*w) + (beta - mean*s); returns (Cp, 9*Cp+8).

    Columns ordered (ky, kx) row-major with Cin innermost (zero-padded to Cp),
    matching the patch-matrix row order in the kernel; column 9*Cp carries the
    folded bias (paired with the all-ones patch row); columns 9*Cp+1..+7 are 0.
    """
    cout, cin = w.shape[0], w.shape[1]
    s = (gamma / jnp.sqrt(var + eps)).astype(jnp.float32)
    wmat = jnp.transpose(w.astype(jnp.float32), (0, 2, 3, 1))   # (Co,ky,kx,Ci)
    wmat = wmat * s[:, None, None, None]
    wpad = jnp.zeros((Cp, 3, 3, Cp), jnp.float32).at[:cout, :, :, :cin].set(wmat)
    wpad = wpad.reshape(Cp, 9 * Cp)
    bias = (beta - mean * s).astype(jnp.float32)
    tail = jnp.zeros((Cp, 8), jnp.float32).at[:cout, 0].set(bias)
    return jnp.concatenate([wpad, tail], axis=1)                # (Cp, 9*Cp+8)


def _pick_images_per_step(n):
    """Images folded into the lane axis per grid step.

    Folding images widens the matmul lane dim and amortizes per-step overhead,
    but we keep >= 2 grid steps whenever N >= 2 so v7x's two TensorCores both
    get work.  On single-TC v5e/v6e, pass images_per_step=N to use one step.
    """
    if n <= 1:
        return 1
    for nb in range(n // 2, 0, -1):
        if n % nb == 0:
            return nb
    return 1


def basic_block_forward(x_nchw, params, images_per_step=None):
    """BasicBlock.forward with stride=1, downsample=None (identity skip)."""
    # TODO(synk): stride > 1 and the downsample path are not implemented (the
    # reference module instance uses stride=1, downsample=None); BatchNorm
    # runs in inference mode (running statistics).
    N, C, H, W = x_nchw.shape
    HW = H * W
    Cp = max(8, -(-C // 8) * 8)                 # channel pad to a sublane tile

    NB = images_per_step or _pick_images_per_step(N)
    assert N % NB == 0, "images_per_step must divide the batch"
    G = N // NB
    L = NB * HW
    KP = 9 * Cp + 8

    w1 = _fold_bn_conv_weights(params["w1"], params["g1"], params["be1"],
                               params["m1"], params["v1"], Cp)
    w2 = _fold_bn_conv_weights(params["w2"], params["g2"], params["be2"],
                               params["m2"], params["v2"], Cp)
    masks = _make_masks(H, W, NB, Cp)

    # Lane-dense, channel-padded activations: (G, Cp, NB*HW).
    x_flat = x_nchw.reshape(N, C, HW).astype(jnp.float32)
    x_pad = jnp.zeros((N, Cp, HW), jnp.float32).at[:, :C, :].set(x_flat)
    x_g = (x_pad.reshape(G, NB, Cp, HW)
                .transpose(0, 2, 1, 3)
                .reshape(G, Cp, L))

    kernel = _make_kernel(W, Cp, L, _roll_shift_sign())
    out_g = pl.pallas_call(
        kernel,
        out_shape=jax.ShapeDtypeStruct((G, Cp, L), jnp.float32),
        grid_spec=pltpu.PrefetchScalarGridSpec(
            num_scalar_prefetch=0,
            grid=(G,),
            in_specs=[
                pl.BlockSpec((1, Cp, L), lambda g: (g, 0, 0)),   # x (group)
                pl.BlockSpec((4 * Cp, L), lambda g: (0, 0)),     # masks
                pl.BlockSpec((Cp, KP), lambda g: (0, 0)),        # w1 (+bias)
                pl.BlockSpec((Cp, KP), lambda g: (0, 0)),        # w2 (+bias)
            ],
            out_specs=pl.BlockSpec((1, Cp, L), lambda g: (g, 0, 0)),
            scratch_shapes=[pltpu.VMEM((KP, L), jnp.float32)],   # im2col
        ),
        compiler_params=pltpu.CompilerParams(
            dimension_semantics=("parallel",)),
    )(x_g, masks, w1, w2)

    out = (out_g.reshape(G, Cp, NB, HW)
                 .transpose(0, 2, 1, 3)
                 .reshape(N, Cp, HW)[:, :C, :]
                 .reshape(N, C, H, W))
    return out


# ---------------------------------------------------------------------------
# Pure-JAX reference
# ---------------------------------------------------------------------------
def reference_basic_block(x_nchw, p):
    """Pure-JAX (XLA conv) reference with identical semantics."""
    x = jnp.transpose(x_nchw, (0, 2, 3, 1)).astype(jnp.float32)

    def conv(h, w):
        return lax.conv_general_dilated(
            h, jnp.transpose(w, (2, 3, 1, 0)),
            window_strides=(1, 1), padding=((1, 1), (1, 1)),
            dimension_numbers=("NHWC", "HWIO", "NHWC"))

    def bn(h, g, b, m, v, eps=1e-5):
        return (h - m) / jnp.sqrt(v + eps) * g + b

    out = jnp.maximum(bn(conv(x, p["w1"]), p["g1"], p["be1"], p["m1"], p["v1"]), 0.0)
    out = bn(conv(out, p["w2"]), p["g2"], p["be2"], p["m2"], p["v2"])
    out = jnp.maximum(out + x, 0.0)
    return jnp.transpose(out, (0, 3, 1, 2))


if __name__ == "__main__":
    N, C, H, W = 2, 4, 16, 16          # inplanes == planes == 4, stride=1
    key = jax.random.PRNGKey(0)
    k_x, k_w1, k_w2 = jax.random.split(key, 3)

    x = jax.random.normal(k_x, (N, C, H, W), jnp.float32)

    ar = jnp.arange(C, dtype=jnp.float32)
    params = {
        # conv weights in PyTorch layout (Cout, Cin, 3, 3), bias=False
        "w1": 0.1 * jax.random.normal(k_w1, (C, C, 3, 3), jnp.float32),
        "w2": 0.1 * jax.random.normal(k_w2, (C, C, 3, 3), jnp.float32),
        # BatchNorm2d(planes) params + running stats (deterministic)
        "g1": 1.0 + 0.10 * ar, "be1": 0.05 * ar,
        "m1": 0.01 * ar,       "v1": 1.0 + 0.02 * ar,
        "g2": 1.0 - 0.05 * ar, "be2": -0.03 * ar,
        "m2": -0.02 * ar,      "v2": 1.0 + 0.01 * ar,
    }

    out = basic_block_forward(x, params)
    out = jax.block_until_ready(out)

    ref = jax.block_until_ready(reference_basic_block(x, params))
    assert out.shape == (N, C, H, W)
    np.testing.assert_allclose(np.asarray(out), np.asarray(ref),
                               rtol=1e-4, atol=1e-4)
    print("KERNEL_OK")
</pallas_src>

<mosaic_0001>
module attributes {stable_mosaic.version = 11 : i64} {
  func.func @probe(%arg0: memref<8x128xf32, #tpu.memory_space<vmem>>, %arg1: memref<8x128xf32, #tpu.memory_space<vmem>>) attributes {dimension_semantics = [], scalar_prefetch = 0 : i64, scratch_operands = 0 : i64, tpu.core_type = #tpu.core_type<tc>} {
    %c0 = arith.constant 0 : index
    %c0_0 = arith.constant 0 : index
    %0 = vector.load %arg0[%c0, %c0_0] : memref<8x128xf32, #tpu.memory_space<vmem>>, vector<8x128xf32>
    %c1_i32 = arith.constant 1 : i32
    %1 = tpu.dynamic_rotate %0 by %c1_i32 dim 1 : vector<8x128xf32>, i32 -> vector<8x128xf32>
    %c0_1 = arith.constant 0 : index
    %c0_2 = arith.constant 0 : index
    %2 = vector.load %arg1[%c0_1, %c0_2] : memref<8x128xf32, #tpu.memory_space<vmem>>, vector<8x128xf32>
    tpu.vector_store %arg1[%c0_1, %c0_2], %1 {strides = array<i32>} : memref<8x128xf32, #tpu.memory_space<vmem>>, vector<8x128xf32>,
    return
  }
}

</mosaic_0001>

<bundles_post_ra>
// kernel: tpu_custom_call.1
= control target key start
LH: loop header
LB: loop body
LE: loop exit
PB: predicated region body
PF: predicated region fallthrough
CT: control target
= control target key end

     0   :  { %6 = vsyncpa [#allocation3], 0  ;;  %s128_s0 = inlined_call_operand.hbm [shape: f32[8,128], index: 0, kind: input, shape index: {}]   ;;  %s129_s1 = inlined_call_operand.hbm [shape: f32[8,128], index: 1, kind: output, shape index: {}]  }
   0x1   :  { %7 = vsyncpa [#allocation4], 0  ;;  %s91_s6 = smov [#allocation2]   ;;  %s43_s10 = scalar_lea.hbm %s128_s0, 128 }
   0x2   :  { %s14_s7 = sshll.u32 %s91_s6, 4  ;;  %p44_p0 = scmp.ne.s32.totalorder %s128_s0, %s43_s10  ;;  %s15_s7 = int_to_ptr.vmem [resolvable:$true] %s14_s7 }
   0x3   :  { %p47_p1 = scmp.lt.u32.totalorder %s43_s10, %s128_s0 }
   0x5   :  { %p49_p2 = pnand %p47_p1, %p44_p0 }
   0x7   :  { %52 = shalt.err (!%p49_p2)
}
   0x8   :  { %s53_s15 = scalar_lea.vmem %s15_s7, 128  ;;  %p58_p4 = scmp.lt.s32.totalorder %s15_s7, %s15_s7 }
   0x9   :  { %p54_p3 = scmp.ne.s32.totalorder %s15_s7, %s53_s15  ;;  %p59_p5 = scmp.lt.s32.totalorder %s53_s15, %s53_s15 }
   0xb   :  { %p60_p6 = por %p59_p5, %p58_p4 }
   0xd   :  { %p61_p7 = pnand %p60_p6, %p54_p3 }
   0xf   :  { %64 = shalt.err (!%p61_p7)
}
  0x10   :  { %17 = dma.hbm_to_vmem [thread:$0]  %s128_s0, 128, %s15_s7, [#allocation3]  }
  0x11   :  { %87 = dma.done.wait [#allocation3], 128  }
  0x12   :  { %88 = vsyncadd [#allocation3], 4294967168  ;;  %v21_v0 = vld [vmem:[#allocation2] sm:$0xff]  ;;  %s92_s18 = smov 1   ;;  %s93_s19 = smov [#allocation5]  }
  0x13   :  { %22 = vrot.lane.b32.xlu0 %v21_v0, %s92_s18  ;;  %s31_s20 = sshll.u32 %s93_s19, 4  ;;  %s32_s20 = int_to_ptr.vmem [resolvable:$true] %s31_s20 }
  0x14   :  { %s65_s21 = scalar_lea.vmem %s32_s20, 128  ;;  %p70_p9 = scmp.lt.s32.totalorder %s32_s20, %s32_s20 }
  0x15   :  { %p66_p8 = scmp.ne.s32.totalorder %s32_s20, %s65_s21  ;;  %p71_p10 = scmp.lt.s32.totalorder %s65_s21, %s65_s21 }
  0x17   :  { %p72_p11 = por %p71_p10, %p70_p9 }
  0x19   :  { %p73_p12 = pnand %p72_p11, %p66_p8 }
  0x85   :  { %v23_v1 = vpop.permute.xlu0 %22 }
  0x86   :  { %24 = vst [vmem:[#allocation5] sm:$0xff] %v23_v1 }
  0x87   :  { %76 = shalt.err (!%p73_p12)
}
  0x88   :  { %s77_s0 = scalar_lea.hbm %s129_s1, 128 }
  0x89   :  { %p78_p13 = scmp.ne.s32.totalorder %s129_s1, %s77_s0  ;;  %p81_p0 = scmp.lt.u32.totalorder %s77_s0, %s129_s1 }
  0x8b   :  { %p83_p1 = pnand %p81_p0, %p78_p13 }
  0x8d   :  { %86 = shalt.err (!%p83_p1)
}
  0x8e   :  { %34 = dma.vmem_to_hbm [thread:$0]  %s32_s20, 128, %s129_s1, [#allocation4]  }
  0x8f   :  { %89 = dma.done.wait [#allocation4], 128  }
  0x90   :  { %90 = vsyncadd [#allocation4], 4294967168 }
  0x91   :  { %38 = vsyncpa [#allocation3], 1 }
  0x92   :  { %39 = vsyncpa [#allocation4], 1 }

</bundles_post_ra>
